<compile_context>
chip_gen: v7x
topology: tpu7x:2x2x1
jax: 0.10.0
libtpu: 0.0.40
codegen_flags: <defaults>
</compile_context>

<pallas_src>
import jax
import jax.numpy as jnp
from jax.experimental import pallas as pl
from jax.experimental.pallas import tpu as pltpu


def _round_up(a: int, m: int) -> int:
    return ((a + m - 1) // m) * m


def _vmem_capacity_bytes() -> int:
    try:
        return int(pltpu.get_tpu_info().vmem_capacity_bytes)
    except Exception:
        return 64 * 1024 * 1024   # conservative fallback: v7x per-TC VMEM


def _pick_tn(Hp: int, tile_n: int) -> int:
    """Lane-dense N tile; prefer multiples of 256 (v6e/v7x MXU width)."""
    if Hp <= tile_n:
        return Hp
    for mult in (256, 128):
        cand = (tile_n // mult) * mult
        while cand >= mult:
            if Hp % cand == 0:
                return cand
            cand -= mult
    return Hp


def _make_kernel(compute_dtype, tn, split_n):
    def kernel(x_ref, w_ref, b_ref, o_ref):
        x = x_ref[...]                                   # (tm, Hp), original dtype
        lhs = x if x.dtype == compute_dtype else x.astype(compute_dtype)
        y = jnp.dot(lhs, w_ref[...], preferred_element_type=jnp.float32)
        if split_n:
            # Residual columns come straight out of the (already resident)
            # matmul LHS tile — no second x stream.
            j = pl.program_id(0)
            start = pl.multiple_of(j * tn, 128)
            res = x_ref[:, pl.ds(start, tn)]
        else:
            res = x
        o_ref[...] = (y + b_ref[...] + res.astype(jnp.float32)).astype(o_ref.dtype)
    return kernel


def residual_linear(x, w, b, *, tile_m=512, tile_n=512, compute_dtype=None,
                    vmem_limit_bytes=None):
    """Fused Residual(Linear) forward: out = x @ w + b + x.

    x: [B, S, H]   w: [H, H] (in-features x out-features)   b: [H] or [1, H]

    compute_dtype: MXU operand dtype. Defaults to bf16 when x is f32 (f32
    accumulation; bias/residual always added in f32).
    """
    B, S, H = x.shape
    M = B * S
    out_dtype = x.dtype
    if compute_dtype is None:
        compute_dtype = jnp.bfloat16 if x.dtype == jnp.float32 else x.dtype
    compute_dtype = jnp.dtype(compute_dtype)

    Hp = _round_up(H, 128)

    # ---- operand staging (no pad over M; pad over H only when misaligned) ----
    x2 = x.reshape(M, H)
    if Hp != H:
        # Needed so the residual tile can be sliced from the lane-padded LHS
        # tile; zero K rows of W keep the matmul exact.
        x2 = jnp.pad(x2, ((0, 0), (0, Hp - H)))
        w_p = jnp.pad(w, ((0, Hp - H), (0, Hp - H))).astype(compute_dtype)
        b_p = jnp.pad(jnp.reshape(b, (1, H)).astype(jnp.float32),
                      ((0, 0), (0, Hp - H)))
    else:
        w_p = w.astype(compute_dtype)
        b_p = jnp.reshape(b, (1, H)).astype(jnp.float32)

    # ---- N tiling -----------------------------------------------------------
    tn = _pick_tn(Hp, int(tile_n))
    n_tiles = Hp // tn
    split_n = n_tiles > 1

    # ---- generation-aware VMEM budget and M tiling --------------------------
    x_bytes = jnp.dtype(x.dtype).itemsize
    c_bytes = compute_dtype.itemsize
    o_bytes = jnp.dtype(out_dtype).itemsize
    if vmem_limit_bytes is None:
        # ~96 MiB on v5e/v6e (128 MiB VMEM), ~48 MiB on v7x (64 MiB VMEM).
        vmem_limit_bytes = (_vmem_capacity_bytes() * 3) // 4
    budget = (int(vmem_limit_bytes) * 4) // 5            # headroom for compiler scratch

    w_bufs = 1 if not split_n else 2                      # single-buffered when index constant
    w_foot = w_bufs * Hp * tn * c_bytes + w_bufs * tn * 4
    per_row = 2 * Hp * x_bytes + 2 * tn * o_bytes         # double-buffered x row + out row
    tm_cap = max(8, (budget - w_foot) // per_row)
    tm = min(int(tile_m), int(tm_cap), _round_up(M, 8))
    tm = max(8, (tm // 8) * 8)
    m_tiles = pl.cdiv(M, tm)

    # ---- cost estimate (x re-read once per N tile under N-outer order) ------
    cost = pl.CostEstimate(
        flops=2 * M * Hp * Hp + 2 * M * Hp,
        transcendentals=0,
        bytes_accessed=(n_tiles * M * Hp * x_bytes
                        + Hp * Hp * c_bytes + Hp * 4
                        + M * Hp * o_bytes),
    )

    if split_n:
        # N outer / M inner: the W tile is reused across the whole M sweep.
        grid = (n_tiles, m_tiles)
        in_specs = [
            pl.BlockSpec((tm, Hp), lambda j, i: (i, 0)),
            pl.BlockSpec((Hp, tn), lambda j, i: (0, j)),   # double-buffered (counted in budget)
            pl.BlockSpec((1, tn), lambda j, i: (0, j)),
        ]
        out_specs = pl.BlockSpec((tm, tn), lambda j, i: (i, j))
        dims = ("parallel", "parallel")
    else:
        # Single N tile: collapse to a 1D grid so megacore splits the M axis
        # (no size-1 leading parallel axis); W/bias index is constant -> one buffer.
        grid = (m_tiles,)
        in_specs = [
            pl.BlockSpec((tm, Hp), lambda i: (i, 0)),
            pl.BlockSpec((Hp, Hp), lambda i: (0, 0), pipeline_mode=pl.Buffered(1)),
            pl.BlockSpec((1, Hp), lambda i: (0, 0), pipeline_mode=pl.Buffered(1)),
        ]
        out_specs = pl.BlockSpec((tm, Hp), lambda i: (i, 0))
        dims = ("parallel",)

    out2 = pl.pallas_call(
        _make_kernel(compute_dtype, tn, split_n),
        out_shape=jax.ShapeDtypeStruct((M, Hp), out_dtype),
        grid_spec=pltpu.PrefetchScalarGridSpec(
            num_scalar_prefetch=0,
            grid=grid,
            in_specs=in_specs,
            out_specs=out_specs,
        ),
        compiler_params=pltpu.CompilerParams(
            dimension_semantics=dims,
            vmem_limit_bytes=int(vmem_limit_bytes),
        ),
        cost_estimate=cost,
    )(x2, w_p, b_p)

    if Hp != H:
        out2 = out2[:, :H]
    return out2.reshape(B, S, H)


if __name__ == "__main__":
    key = jax.random.PRNGKey(0)
    kx, kw, kb, kx2 = jax.random.split(key, 4)

    # --- Case 1: small f32 shapes matching the module spec (B=2, S=8, H=32),
    #     explicit f32 MXU operands for a tight numerical check. ---------------
    B, S, H = 2, 8, 32
    x = jax.random.normal(kx, (B, S, H), dtype=jnp.float32)
    w = jax.random.normal(kw, (H, H), dtype=jnp.float32) * (1.0 / jnp.sqrt(H))
    b = jax.random.normal(kb, (1, H), dtype=jnp.float32) * 0.01

    out = residual_linear(x, w, b, compute_dtype=jnp.float32)
    jax.block_until_ready(out)
    ref = jnp.einsum("bsh,hk->bsk", x, w,
                     precision=jax.lax.Precision.HIGHEST) + b[0] + x
    assert out.shape == (B, S, H)
    assert jnp.allclose(out, ref, atol=1e-4, rtol=1e-4)

    # --- Case 2: ragged M, split N (2D grid + in-kernel residual slicing),
    #     default bf16 MXU path with f32 accumulation. -------------------------
    B2, S2, H2 = 2, 60, 512            # M = 120 (ragged vs tile_m=64), 2 N tiles
    x_b = jax.random.normal(kx2, (B2, S2, H2), dtype=jnp.float32)
    w_b = jax.random.normal(kw, (H2, H2), dtype=jnp.float32) * (1.0 / jnp.sqrt(H2))
    b_b = jax.random.normal(kb, (1, H2), dtype=jnp.float32) * 0.01

    out_b = residual_linear(x_b, w_b, b_b, tile_m=64, tile_n=256)
    jax.block_until_ready(out_b)
    ref_b = jnp.einsum("bsh,hk->bsk", x_b, w_b,
                       precision=jax.lax.Precision.HIGHEST) + b_b[0] + x_b
    assert out_b.shape == (B2, S2, H2)
    assert jnp.allclose(out_b, ref_b, atol=5e-2, rtol=5e-2)

    print("KERNEL_OK")
</pallas_src>

<mosaic_0001>
module attributes {stable_mosaic.version = 11 : i64} {
  func.func @kernel(%arg0: i32, %arg1: memref<16x128xf32, #tpu.memory_space<vmem>>, %arg2: memref<128x128xf32, #tpu.memory_space<vmem>>, %arg3: memref<1x128xf32, #tpu.memory_space<vmem>>, %arg4: memref<16x128xf32, #tpu.memory_space<vmem>>) attributes {dimension_semantics = [#tpu.dimension_semantics<parallel>], iteration_bounds = array<i64: 1>, scalar_prefetch = 0 : i64, scratch_operands = 0 : i64, tpu.core_type = #tpu.core_type<tc>, window_params = [{transform_indices = @transform_0, window_bounds = array<i64: 16, 128>}, {pipeline_mode = #tpu.pipeline_mode<synchronous>, transform_indices = @transform_1, window_bounds = array<i64: 128, 128>}, {pipeline_mode = #tpu.pipeline_mode<synchronous>, transform_indices = @transform_2, window_bounds = array<i64: 1, 128>}, {transform_indices = @transform_3, window_bounds = array<i64: 16, 128>}]} {
    %c0 = arith.constant 0 : index
    %c0_0 = arith.constant 0 : index
    %0 = vector.load %arg1[%c0, %c0_0] : memref<16x128xf32, #tpu.memory_space<vmem>>, vector<16x128xf32>
    %c0_1 = arith.constant 0 : index
    %c0_2 = arith.constant 0 : index
    %1 = vector.load %arg2[%c0_1, %c0_2] : memref<128x128xf32, #tpu.memory_space<vmem>>, vector<128x128xf32>
    %cst = arith.constant dense<0.000000e+00> : vector<16x128xf32>
    %2 = tpu.matmul %0, %1, %cst {dimension_numbers = #tpu.dot_dimension_numbers<[1], [0], [0], [1], [0, 0, 1, 1], [], []>} : vector<16x128xf32>, vector<128x128xf32>, vector<16x128xf32> -> vector<16x128xf32>
    %c0_3 = arith.constant 0 : index
    %c0_4 = arith.constant 0 : index
    %3 = vector.load %arg3[%c0_3, %c0_4] : memref<1x128xf32, #tpu.memory_space<vmem>>, vector<1x128xf32>
    %4 = vector.broadcast %3 : vector<1x128xf32> to vector<16x128xf32>
    %5 = arith.addf %2, %4 : vector<16x128xf32>
    %6 = arith.addf %5, %0 : vector<16x128xf32>
    %c0_5 = arith.constant 0 : index
    %c0_6 = arith.constant 0 : index
    %7 = vector.load %arg4[%c0_5, %c0_6] : memref<16x128xf32, #tpu.memory_space<vmem>>, vector<16x128xf32>
    tpu.vector_store %arg4[%c0_5, %c0_6], %6 {strides = array<i32>} : memref<16x128xf32, #tpu.memory_space<vmem>>, vector<16x128xf32>,
    return
  }
  func.func @transform_0(%arg0: i32) -> (i32, i32) {
    %c0_i32 = arith.constant 0 : i32
    %c0_i32_0 = arith.constant 0 : i32
    return %arg0, %c0_i32 : i32, i32
  }
  func.func @transform_1(%arg0: i32) -> (i32, i32) {
    %c0_i32 = arith.constant 0 : i32
    %c0_i32_0 = arith.constant 0 : i32
    %c0_i32_1 = arith.constant 0 : i32
    return %c0_i32, %c0_i32_0 : i32, i32
  }
  func.func @transform_2(%arg0: i32) -> (i32, i32) {
    %c0_i32 = arith.constant 0 : i32
    %c0_i32_0 = arith.constant 0 : i32
    %c0_i32_1 = arith.constant 0 : i32
    return %c0_i32, %c0_i32_0 : i32, i32
  }
  func.func @transform_3(%arg0: i32) -> (i32, i32) {
    %c0_i32 = arith.constant 0 : i32
    %c0_i32_0 = arith.constant 0 : i32
    return %arg0, %c0_i32 : i32, i32
  }
}

</mosaic_0001>

<bundles_post_ra>
// kernel: tpu_custom_call.1
= control target key start
LH: loop header
LB: loop body
LE: loop exit
PB: predicated region body
PF: predicated region fallthrough
CT: control target
= control target key end

     0   :  { %8 = vsyncpa [#allocation3], 0  ;;  %s401_s0 = inlined_call_operand.hbm [shape: f32[16,128], index: 0, kind: input, shape index: {}]   ;;  %s402_s1 = inlined_call_operand.hbm [shape: f32[128,128], index: 1, kind: input, shape index: {}]   ;;  %s403_s2 = inlined_call_operand.vmem [shape: f32[1,128], index: 2, kind: input, shape index: {}]   ;;  %s404_s3 = inlined_call_operand.hbm [shape: f32[16,128], index: 3, kind: output, shape index: {}]  }
   0x1   :  { %9 = vsyncpa [#allocation6], 0 }
   0x2   :  { %10 = vsyncpa [#allocation4], 0  ;;  %s328_s12 = smov [#allocation2]   ;;  %s256_s16 = scalar_lea.hbm %s401_s0, 256 }
   0x3   :  { %s16_s13 = sshll.u32 %s328_s12, 4  ;;  %p257_p0 = scmp.ne.s32.totalorder %s401_s0, %s256_s16  ;;  %s17_s13 = int_to_ptr.vmem [resolvable:$true] %s16_s13 }
   0x4   :  { %p260_p1 = scmp.lt.u32.totalorder %s256_s16, %s401_s0 }
   0x6   :  { %p262_p2 = pnand %p260_p1, %p257_p0 }
   0x8   :  { %265 = shalt.err (!%p262_p2)
}
   0x9   :  { %s266_s21 = scalar_lea.vmem %s17_s13, 256  ;;  %p271_p4 = scmp.lt.s32.totalorder %s17_s13, %s17_s13 }
   0xa   :  { %p267_p3 = scmp.ne.s32.totalorder %s17_s13, %s266_s21  ;;  %p272_p5 = scmp.lt.s32.totalorder %s266_s21, %s266_s21 }
   0xc   :  { %p273_p6 = por %p272_p5, %p271_p4 }
   0xe   :  { %p274_p7 = pnand %p273_p6, %p267_p3 }
  0x10   :  { %277 = shalt.err (!%p274_p7)
}
  0x11   :  { %s329_s22 = smov 128   ;;  %s330_s23 = smov 8  }
  0x12   :  { %22 = dma.hbm_to_vmem [thread:$0]  %s401_s0, 256, %s17_s13, [#allocation3], %s329_s22, %s329_s22, %s330_s23  }
  0x13   :  { %s331_s26 = smov [#allocation5]   ;;  %s278_s30 = scalar_lea.hbm %s402_s1, 2048 }
  0x14   :  { %s28_s27 = sshll.u32 %s331_s26, 4  ;;  %p279_p8 = scmp.ne.s32.totalorder %s402_s1, %s278_s30  ;;  %s29_s27 = int_to_ptr.vmem [resolvable:$true] %s28_s27 }
  0x15   :  { %p282_p9 = scmp.lt.u32.totalorder %s278_s30, %s402_s1 }
  0x17   :  { %p284_p10 = pnand %p282_p9, %p279_p8 }
  0x19   :  { %287 = shalt.err (!%p284_p10)
}
  0x1a   :  { %s288_s8 = scalar_lea.vmem %s29_s27, 2048  ;;  %p293_p12 = scmp.lt.s32.totalorder %s29_s27, %s29_s27 }
  0x1b   :  { %p289_p11 = scmp.ne.s32.totalorder %s29_s27, %s288_s8  ;;  %p294_p13 = scmp.lt.s32.totalorder %s288_s8, %s288_s8 }
  0x1d   :  { %p295_p0 = por %p294_p13, %p293_p12 }
  0x1f   :  { %p296_p1 = pnand %p295_p0, %p289_p11 }
  0x21   :  { %299 = shalt.err (!%p296_p1)
}
  0x22   :  { %34 = dma.hbm_to_vmem [thread:$0]  %s402_s1, 2048, %s29_s27, [#allocation6], %s329_s22, %s329_s22, %s330_s23  }
  0x23   :  { %322 = dma.done.wait [#allocation3], 256  }
  0x24   :  { %323 = vsyncadd [#allocation3], 4294967040 }
  0x25   :  { %324 = dma.done.wait [#allocation6], 2048  }
  0x26   :  { %325 = vsyncadd [#allocation6], 4294965248  ;;  %v45_v0 = vld [vmem:[#allocation5] sm:$0xff]  ;;  %v46_v1 = vld [vmem:[#allocation5 + $0x8] sm:$0xff]  ;;  %s332_s11 = smov [#allocation7]  }
  0x27   :  { %v47_v2 = vld [vmem:[#allocation5 + $0x10] sm:$0xff]  ;;  %v219_v3 = vpack.c.bf16 %v46_v1, %v45_v0  ;;  %v48_v4 = vld [vmem:[#allocation5 + $0x18] sm:$0xff]  ;;  %v49_v6 = vld [vmem:[#allocation5 + $0x20] sm:$0xff]  ;;  %s152_s12 = sshll.u32 %s332_s11, 4  ;;  %s153_s12 = int_to_ptr.vmem [resolvable:$true] %s152_s12 }
  0x28   :  { %v223_v5 = vpack.c.bf16 %v48_v4, %v47_v2  ;;  %v50_v7 = vld [vmem:[#allocation5 + $0x28] sm:$0xff]  ;;  %v43_v9 = vld [vmem:[#allocation2] sm:$0xff]  ;;  %v52_v11 = vld [vmem:[#allocation5 + $0x38] sm:$0xff]  ;;  %s300_s13 = scalar_lea.vmem %s153_s12, 256  ;;  %p305_p3 = scmp.lt.s32.totalorder %s153_s12, %s153_s12 }
  0x29   :  { %220 = vmatprep.subr.bf16.mxu0 %v219_v3  ;;  %v227_v8 = vpack.c.bf16 %v50_v7, %v49_v6  ;;  %v51_v10 = vld [vmem:[#allocation5 + $0x30] sm:$0xff]  ;;  %216 = vmatprep.mubr.f32.mxu0 %v43_v9  ;;  %v53_v13 = vld [vmem:[#allocation5 + $0x40] sm:$0xff]  ;;  %v54_v14 = vld [vmem:[#allocation5 + $0x48] sm:$0xff]  ;;  %p301_p2 = scmp.ne.s32.totalorder %s153_s12, %s300_s13  ;;  %p306_p4 = scmp.lt.s32.totalorder %s300_s13, %s300_s13 }
  0x2a   :  { %222 = vmatpush3.bf16.msra.mxu0 %v219_v3  ;;  %v231_v12 = vpack.c.bf16 %v52_v11, %v51_v10  ;;  %v235_v15 = vpack.c.bf16 %v54_v14, %v53_v13  ;;  %v55_v16 = vld [vmem:[#allocation5 + $0x50] sm:$0xff]  ;;  %v56_v17 = vld [vmem:[#allocation5 + $0x58] sm:$0xff]  ;;  %v57_v19 = vld [vmem:[#allocation5 + $0x60] sm:$0xff] }
  0x2b   :  { %224 = vmatprep.subr.bf16.mxu0 %v223_v5  ;;  %v239_v18 = vpack.c.bf16 %v56_v17, %v55_v16  ;;  %v58_v20 = vld [vmem:[#allocation5 + $0x68] sm:$0xff]  ;;  %v59_v22 = vld [vmem:[#allocation5 + $0x70] sm:$0xff]  ;;  %v60_v23 = vld [vmem:[#allocation5 + $0x78] sm:$0xff]  ;;  %p307_p5 = por %p306_p4, %p305_p3 }
  0x2c   :  { %v243_v21 = vpack.c.bf16 %v58_v20, %v57_v19  ;;  %v247_v24 = vpack.c.bf16 %v60_v23, %v59_v22  ;;  %v44_v25 = vld [vmem:[#allocation2 + $0x8] sm:$0xff]  ;;  %v165_v26 = vld [vmem:[%s403_s2] ss:$0 sm:$0xff] }
  0x2d   :  { %p308_p6 = pnand %p307_p5, %p301_p2 }
  0x2e   :  { %226 = vmatpush3.bf16.msra.mxu0 %v223_v5 }
  0x2f   :  { %228 = vmatprep.subr.bf16.mxu0 %v227_v8 }
  0x32   :  { %230 = vmatpush3.bf16.msra.mxu0 %v227_v8 }
  0x33   :  { %232 = vmatprep.subr.bf16.mxu0 %v231_v12 }
  0x36   :  { %234 = vmatpush3.bf16.msra.mxu0 %v231_v12 }
  0x37   :  { %236 = vmatprep.subr.bf16.mxu0 %v235_v15 }
  0x3a   :  { %238 = vmatpush3.bf16.msra.mxu0 %v235_v15 }
  0x3b   :  { %240 = vmatprep.subr.bf16.mxu0 %v239_v18 }
  0x3e   :  { %242 = vmatpush3.bf16.msra.mxu0 %v239_v18 }
  0x3f   :  { %244 = vmatprep.subr.bf16.mxu0 %v243_v21 }
  0x42   :  { %246 = vmatpush3.bf16.msra.mxu0 %v243_v21 }
  0x43   :  { %248 = vmatprep.subr.bf16.mxu0 %v247_v24 }
  0x46   :  { %250 = vmatpush3.bf16.msra.mxu0 %v247_v24 }
  0x49   :  { %217 = vmatmul.mubr.f32.vlgmr.msra.gmra.mrb[0].mxu0 %v44_v25 }
 0x11c   :  { %v218_v27 = vpop.f32.mrb[0].mxu0 }
 0x11d   :  { %v140_v28 = vadd.f32 %v218_v27, %v165_v26  ;;  %v134_v29 = vpop.f32.mrb[1].mxu0 }
 0x11e   :  { %v135_v30 = vadd.f32 %v165_v26, %v134_v29 }
 0x11f   :  { %v144_v31 = vadd.f32 %v140_v28, %v44_v25 }
 0x120   :  { %v143_v32 = vadd.f32 %v135_v30, %v43_v9 }
 0x121   :  { %146 = vst [vmem:[#allocation7 + $0x8] sm:$0xff] %v144_v31 }
 0x122   :  { %145 = vst [vmem:[#allocation7] sm:$0xff] %v143_v32 }
 0x123   :  { %311 = shalt.err (!%p308_p6)
}
 0x124   :  { %s312_s15 = scalar_lea.hbm %s404_s3, 256 }
 0x125   :  { %p313_p7 = scmp.ne.s32.totalorder %s404_s3, %s312_s15  ;;  %p316_p8 = scmp.lt.u32.totalorder %s312_s15, %s404_s3 }
 0x127   :  { %p318_p9 = pnand %p316_p8, %p313_p7 }
 0x129   :  { %321 = shalt.err (!%p318_p9)
}
 0x12a   :  { %158 = dma.vmem_to_hbm [thread:$0]  %s153_s12, 256, %s404_s3, [#allocation4], %s329_s22, %s329_s22, %s330_s23  }
 0x12b   :  { %326 = dma.done.wait [#allocation4], 256  }
 0x12c   :  { %327 = vsyncadd [#allocation4], 4294967040 }
 0x12d   :  { %162 = vsyncpa [#allocation3], 1 }
 0x12e   :  { %163 = vsyncpa [#allocation6], 1 }
 0x12f   :  { %164 = vsyncpa [#allocation4], 1 }

</bundles_post_ra>
